<compile_context>
chip_gen: v5e
topology: v5e:2x2
jax: 0.10.0
libtpu: 0.0.40
codegen_flags: <defaults>
</compile_context>

<pallas_src>
import jax
import jax.numpy as jnp
import numpy as np
from jax.experimental import pallas as pl
from jax.experimental.pallas import tpu as pltpu

_NEG_INF = -1e30     # off-edge fill value of the merged mask+bias tensor
_ROW_GUARD = -1e29   # rows whose max logit is below this have no incident edges


# ----------------------------------------------------------------------------
# Attention kernel: one fused logits matmul (K=16) -> masked segment softmax ->
# one fused value matmul (N=16).  Processes an (h_blk, q_blk) tile per grid step.
# ----------------------------------------------------------------------------
def _attn_kernel(q_ref, kt_ref, v_ref, bias_ref, out_ref):
    # q_ref    : (h_blk, q_blk, 16)  pre-scaled packed [scalar | point] queries
    # kt_ref   : (h_blk, 16,    Nk)  pre-scaled packed keys, transposed
    # v_ref    : (h_blk, Nk,    16)  packed [scalar_v | point_v]
    # bias_ref : (h_blk, q_blk, Nk)  merged mask+bias (-1e30 off-edge; on-edge entries
    #                                already include the -0.5*||pk||^2 point-norm term)
    # out_ref  : (h_blk, q_blk, 16)  packed [scalar | point] attention output

    # One MXU pass (contraction K = 16) yields scalar + point cross logits together.
    logits = jnp.einsum("hqd,hdk->hqk", q_ref[...], kt_ref[...],
                        preferred_element_type=jnp.float32)
    logits = logits + bias_ref[...]

    # Masked (per-destination-segment) softmax over keys: off-edge entries sit at ~-1e30
    # and vanish in exp() — no explicit mask select needed.
    m = jnp.max(logits, axis=-1, keepdims=True)
    e = jnp.exp(logits - m)
    denom = jnp.sum(e, axis=-1, keepdims=True)
    alpha = e * pl.reciprocal(denom, approx=True)        # EUP reciprocal, VPU stays free
    # Queries with no incident edge produce zero output (reference would divide by zero).
    alpha = jnp.where(m > _ROW_GUARD, alpha, jnp.zeros_like(alpha))

    # One MXU pass aggregates scalar and point values together (output width 16).
    out_ref[...] = jnp.einsum("hqk,hkd->hqd", alpha, v_ref[...],
                              preferred_element_type=jnp.float32)


def _pick_block(n, candidates=(512, 256, 128)):
    for c in candidates:
        if n % c == 0:
            return c
    return n


# ----------------------------------------------------------------------------
# Wrapper reproducing PointSetAttention.forward (edge_update=False, dropout=0).
# ----------------------------------------------------------------------------
def point_set_attention_pallas(params, x_k, x_q, edge_index, pc_k, pc_q, x_edge,
                               heads=8, point_dim=4):
    H, P = heads, point_dim
    D = 4 * P                                   # packed per-head width: scalar P + point 3P
    N_q, N_k = x_q.shape[0], x_k.shape[0]
    num_attn_logits = 2
    scalar_scale = (num_attn_logits * P) ** (-0.5)
    point_scale = (num_attn_logits * P * (9.0 / 2.0)) ** (-0.5)
    dist_scaling = 10.0

    # ---- projections: left to XLA per review (fuses reshape + point-center add);
    #      Wk|Wv concatenated so x_k is projected in one matmul ----
    q = jnp.einsum("nif,fo->nio", x_q, params["Wq"])
    Wkv = jnp.concatenate([params["Wk"], params["Wv"]], axis=-1)
    kv = jnp.einsum("nif,fo->nio", x_k, Wkv)
    k, v = kv[..., : H * P], kv[..., H * P:]

    scalar_q = q[:, 0, :].reshape(N_q, H, P)
    scalar_k = k[:, 0, :].reshape(N_k, H, P)
    scalar_v = v[:, 0, :].reshape(N_k, H, P)
    point_q = q[:, 1:, :].reshape(N_q, 3, H, P) + pc_q[:, :, None, None] / dist_scaling
    point_k = k[:, 1:, :].reshape(N_k, 3, H, P) + pc_k[:, :, None, None] / dist_scaling
    point_v = v[:, 1:, :].reshape(N_k, 3, H, P) + pc_k[:, :, None, None] / dist_scaling

    # ---- per-head packing with the attention scales folded in (sqrt pre-scaling keeps
    #      the fused Q@K^T cross term exactly s_scale*sq.sk + p_scale*w_h*pq.pk) ----
    a = scalar_scale ** 0.5
    b = jnp.sqrt(point_scale * jax.nn.softplus(params["point_weights"]))        # (H,)

    sq_h = jnp.transpose(scalar_q, (1, 0, 2)) * a                               # (H, Nq, P)
    pq_h = jnp.transpose(point_q, (2, 0, 1, 3)).reshape(H, N_q, 3 * P) * b[:, None, None]
    q_pack = jnp.concatenate([sq_h, pq_h], axis=-1)                             # (H, Nq, 16)

    sk_h = jnp.transpose(scalar_k, (1, 0, 2)) * a
    pk_h = jnp.transpose(point_k, (2, 0, 1, 3)).reshape(H, N_k, 3 * P) * b[:, None, None]
    k_pack = jnp.concatenate([sk_h, pk_h], axis=-1)                             # (H, Nk, 16)
    kt_pack = jnp.transpose(k_pack, (0, 2, 1))                                  # (H, 16, Nk)

    sv_h = jnp.transpose(scalar_v, (1, 0, 2))
    pv_h = jnp.transpose(point_v, (2, 0, 1, 3)).reshape(H, N_k, 3 * P)
    v_pack = jnp.concatenate([sv_h, pv_h], axis=-1)                             # (H, Nk, 16)

    # ---- merged mask + edge bias, with the per-key -0.5*||pk||^2 point-norm term folded
    #      in (the per-query ||pq||^2 term cancels in the softmax and is dropped) ----
    src, dst = edge_index[0], edge_index[1]
    if x_edge is not None:
        edge_bias = jnp.dot(x_edge, params["We"])                               # (E, H)
    else:
        edge_bias = jnp.zeros((src.shape[0], H), jnp.float32)
    k_norm_half = 0.5 * jnp.sum(pk_h * pk_h, axis=-1)                           # (H, Nk)
    edge_vals = edge_bias - k_norm_half[:, src].T                               # (E, H)
    bias_h = jnp.transpose(
        jnp.full((N_q, N_k, H), _NEG_INF, jnp.float32).at[dst, src, :].set(edge_vals),
        (2, 0, 1))                                                              # (H, Nq, Nk)
    # TODO(synk): for large graphs keep the edge bias sparse as (E, H) + scalar-prefetched
    #             offsets (or store bias_h in bf16) instead of a dense f32 (H, Nq, Nk).

    # ---- grid: collapse all heads into one step for small problems, otherwise one head
    #      per step with Nq tiling so the per-step working set stays VMEM-safe ----
    q_blk = _pick_block(N_q)
    all_heads_bytes = 4 * H * max(q_blk, 8) * max(N_k, 128) * 4    # bias + logits + e + alpha
    h_blk = H if all_heads_bytes <= 8 * 2 ** 20 else 1
    grid = (H // h_blk, N_q // q_blk)

    out_pack = pl.pallas_call(
        _attn_kernel,
        grid=grid,
        in_specs=[
            pl.BlockSpec((h_blk, q_blk, D), lambda h, i: (h, i, 0)),      # packed Q
            pl.BlockSpec((h_blk, D, N_k), lambda h, i: (h, 0, 0)),        # packed K^T
            pl.BlockSpec((h_blk, N_k, D), lambda h, i: (h, 0, 0)),        # packed V
            pl.BlockSpec((h_blk, q_blk, N_k), lambda h, i: (h, i, 0)),    # merged mask+bias
        ],
        out_specs=pl.BlockSpec((h_blk, q_blk, D), lambda h, i: (h, i, 0)),
        out_shape=jax.ShapeDtypeStruct((H, N_q, D), jnp.float32),
        compiler_params=pltpu.CompilerParams(
            dimension_semantics=("parallel", "parallel"),   # heads / q tiles are independent
            vmem_limit_bytes=64 * 1024 * 1024,
        ),
    )(q_pack, kt_pack, v_pack, bias_h)

    # ---- unpack combined output, undo the point-center shift, output projection ----
    res_scalar = jnp.transpose(out_pack[:, :, :P], (1, 0, 2))                        # (Nq, H, P)
    res_points = jnp.transpose(out_pack[:, :, P:].reshape(H, N_q, 3, P), (1, 2, 0, 3))
    res_points_local = res_points - pc_q[:, :, None, None] / dist_scaling
    res = jnp.concatenate([res_scalar[:, None], res_points_local], axis=1).reshape(N_q, 4, H * P)
    out = jnp.einsum("nio,of->nif", res, params["Wo"])
    # TODO(synk): edge_update branch (GELUMLP over [attn_logits, x_edge]) not implemented;
    #             GELUMLP is not defined in the reference source (edge_update=False here).
    return out


# ----------------------------------------------------------------------------
# Pure-JAX edge-list reference (mirrors the PyTorch code path) for validation.
# ----------------------------------------------------------------------------
def point_set_attention_reference(params, x_k, x_q, edge_index, pc_k, pc_q, x_edge,
                                  heads=8, point_dim=4):
    H, P = heads, point_dim
    N_q, N_k = x_q.shape[0], x_k.shape[0]
    scalar_scale = (2 * P) ** (-0.5)
    point_scale = (2 * P * 4.5) ** (-0.5)

    q = jnp.einsum("nif,fo->nio", x_q, params["Wq"])
    k = jnp.einsum("nif,fo->nio", x_k, params["Wk"])
    v = jnp.einsum("nif,fo->nio", x_k, params["Wv"])

    scalar_q = q[:, 0].reshape(N_q, H, P)
    scalar_k = k[:, 0].reshape(N_k, H, P)
    scalar_v = v[:, 0].reshape(N_k, H, P)
    point_q = q[:, 1:].reshape(N_q, 3, H, P) + pc_q[:, :, None, None] / 10.0
    point_k = k[:, 1:].reshape(N_k, 3, H, P) + pc_k[:, :, None, None] / 10.0
    point_v = v[:, 1:].reshape(N_k, 3, H, P) + pc_k[:, :, None, None] / 10.0

    src, dst = edge_index[0], edge_index[1]
    scalar_logits = (scalar_q[dst] * scalar_k[src]).sum(-1) * scalar_scale
    pw = jax.nn.softplus(params["point_weights"])[None]
    point_logits = jnp.square(point_q[dst] - point_k[src]).sum(axis=(-3, -1)) * point_scale
    edge_bias = x_edge @ params["We"] if x_edge is not None else 0.0
    logits = scalar_logits - 0.5 * point_logits * pw + edge_bias

    seg_max = jax.ops.segment_max(logits, dst, num_segments=N_q)
    e = jnp.exp(logits - seg_max[dst])
    denom = jax.ops.segment_sum(e, dst, num_segments=N_q)
    alpha = e / denom[dst]

    res_scalar = jax.ops.segment_sum(alpha[:, :, None] * scalar_v[src], dst, num_segments=N_q)
    res_points = jax.ops.segment_sum(alpha[:, None, :, None] * point_v[src], dst, num_segments=N_q)
    res_points_local = res_points - pc_q[:, :, None, None] / 10.0
    res = jnp.concatenate([res_scalar[:, None], res_points_local], axis=1).reshape(N_q, 4, H * P)
    return jnp.einsum("nio,of->nif", res, params["Wo"])


if __name__ == "__main__":
    N_k, N_q, FIBER, H, P, EDGE_DIM = 16, 12, 32, 8, 4, 16

    key = jax.random.PRNGKey(0)
    keys = jax.random.split(key, 11)
    x_k = jax.random.normal(keys[0], (N_k, 4, FIBER), jnp.float32)
    x_q = jax.random.normal(keys[1], (N_q, 4, FIBER), jnp.float32)
    pc_k = jax.random.normal(keys[2], (N_k, 3), jnp.float32)
    pc_q = jax.random.normal(keys[3], (N_q, 3), jnp.float32)

    # deterministic duplicate-free edge list: each query node attends to 5 key nodes
    dst_np = np.repeat(np.arange(N_q), 5)
    src_np = np.concatenate([(np.arange(5) + 3 * qi) % N_k for qi in range(N_q)])
    edge_index = jnp.asarray(np.stack([src_np, dst_np]), jnp.int32)   # (2, E), E = 60
    E = edge_index.shape[1]
    x_edge = jax.random.normal(keys[4], (E, EDGE_DIM), jnp.float32)

    params = {
        "Wq": 0.1 * jax.random.normal(keys[5], (FIBER, H * P), jnp.float32),
        "Wk": 0.1 * jax.random.normal(keys[6], (FIBER, H * P), jnp.float32),
        "Wv": 0.1 * jax.random.normal(keys[7], (FIBER, H * P), jnp.float32),
        "We": 0.1 * jax.random.normal(keys[8], (EDGE_DIM, H), jnp.float32),
        "Wo": 0.1 * jax.random.normal(keys[9], (H * P, FIBER), jnp.float32),
        # same init as the module: log(exp(1) - 1)  ->  softplus(.) == 1
        "point_weights": jnp.full((H,), float(np.log(np.expm1(1.0))), jnp.float32),
    }

    out = point_set_attention_pallas(params, x_k, x_q, edge_index, pc_k, pc_q, x_edge,
                                     heads=H, point_dim=P)
    out = jax.block_until_ready(out)

    ref = point_set_attention_reference(params, x_k, x_q, edge_index, pc_k, pc_q, x_edge,
                                        heads=H, point_dim=P)
    np.testing.assert_allclose(np.asarray(out), np.asarray(ref), atol=2e-3, rtol=1e-2)
    print("KERNEL_OK")
</pallas_src>

<mosaic_0001>
module attributes {stable_mosaic.version = 11 : i64} {
  func.func @_attn_kernel(%arg0: i32, %arg1: i32, %arg2: memref<8x12x16xf32, #tpu.memory_space<vmem>>, %arg3: memref<8x16x16xf32, #tpu.memory_space<vmem>>, %arg4: memref<8x16x16xf32, #tpu.memory_space<vmem>>, %arg5: memref<8x12x16xf32, #tpu.memory_space<vmem>>, %arg6: memref<8x12x16xf32, #tpu.memory_space<vmem>>) attributes {dimension_semantics = [#tpu.dimension_semantics<parallel>, #tpu.dimension_semantics<parallel>], iteration_bounds = array<i64: 1, 1>, scalar_prefetch = 0 : i64, scratch_operands = 0 : i64, tpu.core_type = #tpu.core_type<tc>, window_params = [{transform_indices = @transform_0, window_bounds = array<i64: 8, 12, 16>}, {transform_indices = @transform_1, window_bounds = array<i64: 8, 16, 16>}, {transform_indices = @transform_2, window_bounds = array<i64: 8, 16, 16>}, {transform_indices = @transform_3, window_bounds = array<i64: 8, 12, 16>}, {transform_indices = @transform_4, window_bounds = array<i64: 8, 12, 16>}]} {
    %c0 = arith.constant 0 : index
    %c0_0 = arith.constant 0 : index
    %c0_1 = arith.constant 0 : index
    %0 = vector.load %arg2[%c0, %c0_0, %c0_1] : memref<8x12x16xf32, #tpu.memory_space<vmem>>, vector<8x12x16xf32>
    %c0_2 = arith.constant 0 : index
    %c0_3 = arith.constant 0 : index
    %c0_4 = arith.constant 0 : index
    %1 = vector.load %arg3[%c0_2, %c0_3, %c0_4] : memref<8x16x16xf32, #tpu.memory_space<vmem>>, vector<8x16x16xf32>
    "tpu.trace_start"() <{level = 10 : i32, message = "hqd,hdk->hqk"}> : () -> ()
    %cst = arith.constant dense<0.000000e+00> : vector<8x12x16xf32>
    %2 = tpu.matmul %0, %1, %cst {dimension_numbers = #tpu.dot_dimension_numbers<[2], [1], [1], [2], [0, 0, 0, 1, 1, 2], [0], [0]>} : vector<8x12x16xf32>, vector<8x16x16xf32>, vector<8x12x16xf32> -> vector<8x12x16xf32>
    "tpu.trace_stop"() : () -> ()
    %c0_5 = arith.constant 0 : index
    %c0_6 = arith.constant 0 : index
    %c0_7 = arith.constant 0 : index
    %3 = vector.load %arg5[%c0_5, %c0_6, %c0_7] : memref<8x12x16xf32, #tpu.memory_space<vmem>>, vector<8x12x16xf32>
    %4 = arith.addf %2, %3 : vector<8x12x16xf32>
    %cst_8 = arith.constant dense<0xFF800000> : vector<8x12xf32>
    %5 = vector.multi_reduction <maximumf>, %4, %cst_8 [2] : vector<8x12x16xf32> to vector<8x12xf32>
    %6 = vector.shape_cast %5 : vector<8x12xf32> to vector<8x12x1xf32>
    %7 = vector.broadcast %6 : vector<8x12x1xf32> to vector<8x12x16xf32>
    %8 = arith.subf %4, %7 : vector<8x12x16xf32>
    %9 = math.exp %8 : vector<8x12x16xf32>
    %cst_9 = arith.constant dense<0.000000e+00> : vector<8x12xf32>
    %10 = vector.multi_reduction <add>, %9, %cst_9 [2] : vector<8x12x16xf32> to vector<8x12xf32>
    %11 = vector.shape_cast %10 : vector<8x12xf32> to vector<8x12x1xf32>
    %12 = tpu.reciprocal %11 {approx = true} : vector<8x12x1xf32> -> vector<8x12x1xf32>
    %13 = vector.broadcast %12 : vector<8x12x1xf32> to vector<8x12x16xf32>
    %14 = arith.mulf %9, %13 : vector<8x12x16xf32>
    %cst_10 = arith.constant -1.000000e+29 : f32
    %15 = vector.broadcast %cst_10 : f32 to vector<8x12x1xf32>
    %16 = arith.cmpf ogt, %6, %15 : vector<8x12x1xf32>
    %cst_11 = arith.constant 0.000000e+00 : f32
    %17 = vector.broadcast %cst_11 : f32 to vector<8x12x16xf32>
    %18 = vector.shape_cast %16 : vector<8x12x1xi1> to vector<8x12x1xi1>
    %19 = vector.broadcast %18 : vector<8x12x1xi1> to vector<8x12x16xi1>
    %20 = arith.select %19, %14, %17 : vector<8x12x16xi1>, vector<8x12x16xf32>
    %c0_12 = arith.constant 0 : index
    %c0_13 = arith.constant 0 : index
    %c0_14 = arith.constant 0 : index
    %21 = vector.load %arg4[%c0_12, %c0_13, %c0_14] : memref<8x16x16xf32, #tpu.memory_space<vmem>>, vector<8x16x16xf32>
    "tpu.trace_start"() <{level = 10 : i32, message = "hqk,hkd->hqd"}> : () -> ()
    %cst_15 = arith.constant dense<0.000000e+00> : vector<8x12x16xf32>
    %22 = tpu.matmul %20, %21, %cst_15 {dimension_numbers = #tpu.dot_dimension_numbers<[2], [1], [1], [2], [0, 0, 0, 1, 1, 2], [0], [0]>} : vector<8x12x16xf32>, vector<8x16x16xf32>, vector<8x12x16xf32> -> vector<8x12x16xf32>
    "tpu.trace_stop"() : () -> ()
    %c0_16 = arith.constant 0 : index
    %c0_17 = arith.constant 0 : index
    %c0_18 = arith.constant 0 : index
    %23 = vector.load %arg6[%c0_16, %c0_17, %c0_18] : memref<8x12x16xf32, #tpu.memory_space<vmem>>, vector<8x12x16xf32>
    tpu.vector_store %arg6[%c0_16, %c0_17, %c0_18], %22 {strides = array<i32>} : memref<8x12x16xf32, #tpu.memory_space<vmem>>, vector<8x12x16xf32>,
    return
  }
  func.func @transform_0(%arg0: i32, %arg1: i32) -> (i32, i32, i32) {
    %c0_i32 = arith.constant 0 : i32
    %c0_i32_0 = arith.constant 0 : i32
    return %arg0, %arg1, %c0_i32 : i32, i32, i32
  }
  func.func @transform_1(%arg0: i32, %arg1: i32) -> (i32, i32, i32) {
    %c0_i32 = arith.constant 0 : i32
    %c0_i32_0 = arith.constant 0 : i32
    %c0_i32_1 = arith.constant 0 : i32
    return %arg0, %c0_i32, %c0_i32_0 : i32, i32, i32
  }
  func.func @transform_2(%arg0: i32, %arg1: i32) -> (i32, i32, i32) {
    %c0_i32 = arith.constant 0 : i32
    %c0_i32_0 = arith.constant 0 : i32
    %c0_i32_1 = arith.constant 0 : i32
    return %arg0, %c0_i32, %c0_i32_0 : i32, i32, i32
  }
  func.func @transform_3(%arg0: i32, %arg1: i32) -> (i32, i32, i32) {
    %c0_i32 = arith.constant 0 : i32
    %c0_i32_0 = arith.constant 0 : i32
    return %arg0, %arg1, %c0_i32 : i32, i32, i32
  }
  func.func @transform_4(%arg0: i32, %arg1: i32) -> (i32, i32, i32) {
    %c0_i32 = arith.constant 0 : i32
    %c0_i32_0 = arith.constant 0 : i32
    return %arg0, %arg1, %c0_i32 : i32, i32, i32
  }
}

</mosaic_0001>

<bundles_post_ra>
// kernel: tpu_custom_call.1
= control target key start
LH: loop header
LB: loop body
LE: loop exit
PB: predicated region body
PF: predicated region fallthrough
CT: control target
= control target key end

     0   :  { %vm65_vm0 = vcmask 130048   ;;  %vm301_vm1 = vcmask 125952   ;;  %s1440_s1 = inlined_call_operand.vmem [shape: f32[8,16,16], index: 1, kind: input, shape index: {}]   ;;  %s1441_s0 = inlined_call_operand.vmem [shape: f32[8,12,16], index: 0, kind: input, shape index: {}]   ;;  %s1442_s3 = inlined_call_operand.vmem [shape: f32[8,12,16], index: 3, kind: input, shape index: {}]   ;;  %s1443_s2 = inlined_call_operand.vmem [shape: f32[8,16,16], index: 2, kind: input, shape index: {}]   ;;  %s1444_s4 = inlined_call_operand.vmem [shape: f32[8,12,16], index: 4, kind: output, shape index: {}]  }
   0x1   :  { %v34_v0 = vld [vmem:[%s1440_s1 + $0x8] sm:$0xff]  ;;  %v33_v2 = vld [vmem:[%s1440_s1] sm:$0xff]  ;;  %v40_v4 = vld [vmem:[%s1440_s1 + $0x38] sm:$0xff] }
   0x2   :  { %v38_v1 = vld [vmem:[%s1440_s1 + $0x28] sm:$0xff]  ;;  %86 = vmatpush.msra.mxu0 %v34_v0  ;;  %v37_v3 = vld [vmem:[%s1440_s1 + $0x20] sm:$0xff]  ;;  %173 = vmatpush.msra.mxu3 %v40_v4  ;;  %v39_v7 = vld [vmem:[%s1440_s1 + $0x30] sm:$0xff] }
   0x3   :  { %144 = vmatpush.msra.mxu2 %v38_v1  ;;  %v17_v5 = vld [vmem:[%s1441_s0] sm:$0xff]  ;;  %v23_v8 = vld [vmem:[%s1441_s0 + $0x30] sm:$0xff]  ;;  %v36_v9 = vld [vmem:[%s1440_s1 + $0x18] sm:$0xff] }
   0x4   :  { %v21_v6 = vld [vmem:[%s1441_s0 + $0x20] sm:$0xff]  ;;  %87 = vmatpush.msra.mxu0 %v33_v2  ;;  %v35_v10 = vld [vmem:[%s1440_s1 + $0x10] sm:$0xff]  ;;  %v46_v11 = vld [vmem:[%s1440_s1 + $0x68] sm:$0xff]  ;;  %174 = vmatpush.msra.mxu3 %v39_v7 }
   0x5   :  { %145 = vmatpush.msra.mxu2 %v37_v3  ;;  %807 = vmatmul.msk.f32.vlgmr.msra.gmra.mxu0 %vm65_vm0, %v17_v5  ;;  %v19_v12 = vld [vmem:[%s1441_s0 + $0x10] sm:$0xff]  ;;  %v48_v13 = vld [vmem:[%s1440_s1 + $0x78] sm:$0xff]  ;;  %v42_v15 = vld [vmem:[%s1440_s1 + $0x48] sm:$0xff] }
   0x6   :  { %811 = vmatmul.msk.f32.vlgmr.msra.gmra.mxu2 %vm65_vm0, %v21_v6  ;;  %115 = vmatpush.msra.mxu1 %v36_v9  ;;  %v47_v14 = vld [vmem:[%s1440_s1 + $0x70] sm:$0xff]  ;;  %v45_v16 = vld [vmem:[%s1440_s1 + $0x60] sm:$0xff]  ;;  %v44_v18 = vld [vmem:[%s1440_s1 + $0x58] sm:$0xff] }
   0x7   :  { %813 = vmatmul.msk.f32.vlgmr.msra.gmra.mxu3 %vm65_vm0, %v23_v8  ;;  %260 = vmatpush.msrb.mxu2 %v46_v11  ;;  %v41_v17 = vld [vmem:[%s1440_s1 + $0x40] sm:$0xff]  ;;  %v22_v19 = vld [vmem:[%s1441_s0 + $0x28] sm:$0xf]  ;;  %v43_v21 = vld [vmem:[%s1440_s1 + $0x50] sm:$0xff] }
   0x8   :  { %116 = vmatpush.msra.mxu1 %v35_v10  ;;  %289 = vmatpush.msrb.mxu3 %v48_v13  ;;  %v18_v20 = vld [vmem:[%s1441_s0 + $0x8] sm:$0xf]  ;;  %v24_v22 = vld [vmem:[%s1441_s0 + $0x38] sm:$0xf]  ;;  %v25_v24 = vld [vmem:[%s1441_s0 + $0x40] sm:$0xff] }
   0x9   :  { %809 = vmatmul.msk.f32.vlgmr.msra.gmra.mxu1 %vm65_vm0, %v19_v12  ;;  %202 = vmatpush.msrb.mxu0 %v42_v15  ;;  %v20_v23 = vld [vmem:[%s1441_s0 + $0x18] sm:$0xf]  ;;  %v29_v25 = vld [vmem:[%s1441_s0 + $0x60] sm:$0xff]  ;;  %v31_v26 = vld [vmem:[%s1441_s0 + $0x70] sm:$0xff] }
   0xa   :  { %290 = vmatpush.msrb.mxu3 %v47_v14  ;;  %261 = vmatpush.msrb.mxu2 %v45_v16  ;;  %v27_v27 = vld [vmem:[%s1441_s0 + $0x50] sm:$0xff]  ;;  %v30_v28 = vld [vmem:[%s1441_s0 + $0x68] sm:$0xf]  ;;  %v32_v30 = vld [vmem:[%s1441_s0 + $0x78] sm:$0xf] }
   0xb   :  { %203 = vmatpush.msrb.mxu0 %v41_v17  ;;  %231 = vmatpush.msrb.mxu1 %v44_v18  ;;  %v26_v29 = vld [vmem:[%s1441_s0 + $0x48] sm:$0xf]  ;;  %v28_v31 = vld [vmem:[%s1441_s0 + $0x58] sm:$0xf]  ;;  %v49_v32 = vld [vmem:[%s1442_s3] sm:$0xff] }
   0xc   :  { %v51_v35 = vld [vmem:[%s1442_s3 + $0x10] sm:$0xff]  ;;  %v53_v37 = vld [vmem:[%s1442_s3 + $0x20] sm:$0xff]  ;;  %v52_v47 = vld [vmem:[%s1442_s3 + $0x18] sm:$0xf] }
   0xd   :  { %808 = vmatmul.msk.f32.gmra.mxu0 %vm65_vm0, %v18_v20  ;;  %232 = vmatpush.msrb.mxu1 %v43_v21  ;;  %v55_v42 = vld [vmem:[%s1442_s3 + $0x30] sm:$0xff]  ;;  %v54_v49 = vld [vmem:[%s1442_s3 + $0x28] sm:$0xf]  ;;  %v56_v56 = vld [vmem:[%s1442_s3 + $0x38] sm:$0xf] }
   0xe   :  { %812 = vmatmul.msk.f32.gmra.mxu2 %vm65_vm0, %v22_v19  ;;  %v50_v55 = vld [vmem:[%s1442_s3 + $0x8] sm:$0xf]  ;;  %v57_v60 = vld [vmem:[%s1442_s3 + $0x40] sm:$0xff]  ;;  %v63_v4 = vld [vmem:[%s1442_s3 + $0x70] sm:$0xff] }
   0xf   :  { %814 = vmatmul.msk.f32.gmra.mxu3 %vm65_vm0, %v24_v22  ;;  %v61_v6 = vld [vmem:[%s1442_s3 + $0x60] sm:$0xff]  ;;  %v64_v10 = vld [vmem:[%s1442_s3 + $0x78] sm:$0xf]  ;;  %v59_v15 = vld [vmem:[%s1442_s3 + $0x50] sm:$0xff] }
  0x10   :  { %v62_v16 = vld [vmem:[%s1442_s3 + $0x68] sm:$0xf] }
  0x11   :  { %810 = vmatmul.msk.f32.gmra.mxu1 %vm65_vm0, %v20_v23 }
  0x15   :  { %815 = vmatmul.msk.f32.vlgmr.msrb.gmra.mxu0 %vm65_vm0, %v25_v24  ;;  %v58_v24 = vld [vmem:[%s1442_s3 + $0x48] sm:$0xf] }
  0x16   :  { %819 = vmatmul.msk.f32.vlgmr.msrb.gmra.mxu2 %vm65_vm0, %v29_v25 }
  0x17   :  { %821 = vmatmul.msk.f32.vlgmr.msrb.gmra.mxu3 %vm65_vm0, %v31_v26  ;;  %v60_v26 = vld [vmem:[%s1442_s3 + $0x58] sm:$0xf] }
  0x19   :  { %817 = vmatmul.msk.f32.vlgmr.msrb.gmra.mxu1 %vm65_vm0, %v27_v27 }
  0x1d   :  { %816 = vmatmul.msk.f32.gmra.mxu0 %vm65_vm0, %v26_v29 }
  0x1e   :  { %820 = vmatmul.msk.f32.gmra.mxu2 %vm65_vm0, %v30_v28 }
  0x1f   :  { %822 = vmatmul.msk.f32.gmra.mxu3 %vm65_vm0, %v32_v30 }
  0x21   :  { %818 = vmatmul.msk.f32.gmra.mxu1 %vm65_vm0, %v28_v31 }
  0x82   :  { %v89_v33 = vpop.f32.mrf.mxu0 }
  0x83   :  { %v1043_v34 = vadd.f32 %v89_v33, %v49_v32 }
  0x85   :  { %v298_v36 = vsel %vm65_vm0, %v1043_v34, -inf }
  0x86   :  { %299 = vmax.xlane.f32.xlu1 %v298_v36  ;;  %v118_v38 = vpop.f32.mrf.mxu1 }
  0x87   :  { %v1053_v39 = vadd.f32 %v118_v38, %v51_v35 }
  0x89   :  { %v147_v40 = vpop.f32.mrf.mxu2  ;;  %v305_v46 = vsel %vm65_vm0, %v1053_v39, -inf }
  0x8a   :  { %v1055_v41 = vadd.f32 %v147_v40, %v53_v37  ;;  %v176_v43 = vpop.f32.mrf.mxu3  ;;  %v92_v44 = vpop.f32.mrf.mxu0 }
  0x8b   :  { %v1067_v48 = vadd.f32 %v176_v43, %v55_v42  ;;  %v1091_v62 = vadd.f32 %v92_v44, %v50_v55 }
  0x8c   :  { %v311_v45 = vsel %vm65_vm0, %v1055_v41, -inf }
  0x8d   :  { %312 = vmax.xlane.f32.xlu0 %v311_v45  ;;  %v317_v54 = vsel %vm65_vm0, %v1067_v48, -inf  ;;  %v302_v3 = vsel %vm301_vm1, %v1091_v62, -inf }
  0x8e   :  { %306 = vmax.xlane.f32.xlu1 %v305_v46  ;;  %v121_v50 = vpop.f32.mrf.mxu1 }
  0x8f   :  { %v1072_v51 = vadd.f32 %v121_v50, %v52_v47 }
  0x91   :  { %v150_v52 = vpop.f32.mrf.mxu2  ;;  %v308_v59 = vsel %vm301_vm1, %v1072_v51, -inf }
  0x92   :  { %v1074_v53 = vadd.f32 %v150_v52, %v54_v49  ;;  %v179_v57 = vpop.f32.mrf.mxu3  ;;  %v205_v61 = vpop.f32.mrf.mxu0 }
  0x93   :  { %v1093_v63 = vadd.f32 %v179_v57, %v56_v56  ;;  %v1095_v0 = vadd.f32 %v205_v61, %v57_v60 }
  0x94   :  { %v314_v58 = vsel %vm301_vm1, %v1074_v53, -inf }
  0x95   :  { %315 = vmax.xlane.f32.xlu2 %v314_v58  ;;  %318 = vmax.xlane.f32.xlu0 %v317_v54  ;;  %v320_v2 = vsel %vm301_vm1, %v1093_v63, -inf  ;;  %v323_v7 = vsel %vm65_vm0, %v1095_v0, -inf }
  0x96   :  { %309 = vmax.xlane.f32.xlu1 %v308_v59  ;;  %v234_v11 = vpop.f32.mrf.mxu1 }
  0x97   :  { %v1130_v20 = vadd.f32 %v234_v11, %v59_v15 }
  0x99   :  { %v263_v1 = vpop.f32.mrf.mxu2  ;;  %v329_v22 = vsel %vm65_vm0, %v1130_v20, -inf }
  0x9a   :  { %v292_v5 = vpop.f32.mrf.mxu3  ;;  %v1111_v9 = vadd.f32 %v263_v1, %v61_v6  ;;  %v208_v25 = vpop.f32.mrf.mxu0 }
  0x9b   :  { %v1109_v8 = vadd.f32 %v292_v5, %v63_v4  ;;  %v1144_v28 = vadd.f32 %v208_v25, %v58_v24 }
  0x9c   :  { %v335_v12 = vsel %vm65_vm0, %v1111_v9, -inf }
  0x9d   :  { %321 = vmax.xlane.f32.xlu2 %v320_v2  ;;  %303 = vmax.xlane.f32.xlu0 %v302_v3  ;;  %v341_v13 = vsel %vm65_vm0, %v1109_v8, -inf  ;;  %v326_v30 = vsel %vm301_vm1, %v1144_v28, -inf }
  0x9e   :  { %324 = vmax.xlane.f32.xlu1 %v323_v7  ;;  %v237_v27 = vpop.f32.mrf.mxu1 }
  0x9f   :  { %v1146_v29 = vadd.f32 %v237_v27, %v60_v26 }
  0xa1   :  { %v266_v17 = vpop.f32.mrf.mxu2  ;;  %v332_v31 = vsel %vm301_vm1, %v1146_v29, -inf }
  0xa2   :  { %v295_v14 = vpop.f32.mrf.mxu3  ;;  %v1132_v21 = vadd.f32 %v266_v17, %v62_v16 }
  0xa3   :  { %v1126_v18 = vadd.f32 %v295_v14, %v64_v10 }
  0xa4   :  { %v338_v23 = vsel %vm301_vm1, %v1132_v21, -inf }
  0xa5   :  { %336 = vmax.xlane.f32.xlu2 %v335_v12  ;;  %342 = vmax.xlane.f32.xlu0 %v341_v13  ;;  %v344_v19 = vsel %vm301_vm1, %v1126_v18, -inf }
  0xa6   :  { %345 = vmax.xlane.f32.xlu1 %v344_v19 }
  0xad   :  { %330 = vmax.xlane.f32.xlu2 %v329_v22  ;;  %339 = vmax.xlane.f32.xlu0 %v338_v23 }
  0xb5   :  { %327 = vmax.xlane.f32.xlu2 %v326_v30  ;;  %333 = vmax.xlane.f32.xlu0 %v332_v31 }
  0xf9   :  { %v1152_v32 = vpop.xlane.xlu1 %299 }
  0xfa   :  { %v347_v33 = vsub.f32 %v1043_v34, %v1152_v32  ;;  %vm475_vm2 = vcmp.gt.f32.partialorder %v1152_v32, -1e+29 }
  0xfc   :  { %v363_v35 = vmul.f32 1.442695, %v347_v33 }
  0xfe   :  { %839 = vpow2.f32 %v363_v35 }
 0x100   :  { %v1156_v36 = vpop.xlane.xlu0 %312 }
 0x101   :  { %v1158_v37 = vpop.xlane.xlu1 %306  ;;  %v351_v42 = vsub.f32 %v1055_v41, %v1156_v36  ;;  %vm479_vm5 = vcmp.gt.f32.partialorder %v1156_v36, -1e+29 }
 0x102   :  { %v349_v38 = vsub.f32 %v1053_v39, %v1158_v37  ;;  %vm477_vm3 = vcmp.gt.f32.partialorder %v1158_v37, -1e+29 }
 0x103   :  { %v371_v46 = vmul.f32 1.442695, %v351_v42 }
 0x104   :  { %v1162_v40 = vpop.eup %839  ;;  %v367_v43 = vmul.f32 1.442695, %v349_v38 }
 0x105   :  { %v395_v44 = vsel %vm65_vm0, %v1162_v40, 0.0 }
 0x106   :  { %841 = vpow2.f32 %v367_v43  ;;  %396 = vadd.xlane.f32.xlu0 %v395_v44 }
 0x107   :  { %843 = vpow2.f32 %v371_v46 }
 0x108   :  { %v1168_v34 = vpop.xlane.xlu2 %315  ;;  %v1170_v45 = vpop.xlane.xlu0 %318 }
 0x109   :  { %v353_v47 = vsub.f32 %v1067_v48, %v1170_v45  ;;  %v1174_v39 = vpop.xlane.xlu1 %309  ;;  %v352_v61 = vsub.f32 %v1074_v53, %v1168_v34  ;;  %vm481_vm4 = vcmp.gt.f32.partialorder %v1170_v45, -1e+29  ;;  %vm480_vm9 = vcmp.gt.f32.partialorder %v1168_v34, -1e+29 }
 0x10a   :  { %v350_v41 = vsub.f32 %v1072_v51, %v1174_v39  ;;  %vm478_vm7 = vcmp.gt.f32.partialorder %v1174_v39, -1e+29 }
 0x10b   :  { %v375_v49 = vmul.f32 1.442695, %v353_v47  ;;  %v373_v2 = vmul.f32 1.442695, %v352_v61  ;;  %v540_v61 = vld [vmem:[%s1443_s2 + $0x8] sm:$0xff] }
 0x10c   :  { %v1178_v50 = vpop.eup %841  ;;  %v369_v54 = vmul.f32 1.442695, %v350_v41  ;;  %575 = vmatpush.msra.mxu0 %v540_v61 }
 0x10d   :  { %845 = vpow2.f32 %v375_v49  ;;  %v401_v52 = vsel %vm65_vm0, %v1178_v50, 0.0  ;;  %v1190_v51 = vpop.eup %843 }
 0x10e   :  { %402 = vadd.xlane.f32.xlu1 %v401_v52  ;;  %847 = vpow2.f32 %v369_v54 }
 0x110   :  { %v1182_v55 = vpop.xlane.xlu2 %321  ;;  %v1184_v56 = vpop.xlane.xlu0 %303 }
 0x111   :  { %v354_v48 = vsub.f32 %v1093_v63, %v1182_v55  ;;  %v348_v57 = vsub.f32 %v1091_v62, %v1184_v56  ;;  %v407_v63 = vsel %vm65_vm0, %v1190_v51, 0.0  ;;  %v1200_v62 = vpop.xlane.xlu1 %324  ;;  %vm482_vm6 = vcmp.gt.f32.partialorder %v1182_v55, -1e+29 }
 0x112   :  { %v355_v13 = vsub.f32 %v1095_v0, %v1200_v62  ;;  %vm476_vm8 = vcmp.gt.f32.partialorder %v1184_v56, -1e+29  ;;  %vm483_vm12 = vcmp.gt.f32.partialorder %v1200_v62, -1e+29 }
 0x113   :  { %v377_v58 = vmul.f32 1.442695, %v354_v48  ;;  %v365_v59 = vmul.f32 1.442695, %v348_v57  ;;  %v1192_v60 = vpop.eup %845 }
 0x114   :  { %v413_v1 = vsel %vm65_vm0, %v1192_v60, 0.0  ;;  %v1210_v6 = vpop.eup %847  ;;  %v379_v15 = vmul.f32 1.442695, %v355_v13 }
 0x115   :  { %849 = vpow2.f32 %v377_v58  ;;  %414 = vadd.xlane.f32.xlu2 %v413_v1  ;;  %v539_v1 = vld [vmem:[%s1443_s2] sm:$0xff] }
 0x116   :  { %851 = vpow2.f32 %v365_v59  ;;  %408 = vadd.xlane.f32.xlu1 %v407_v63  ;;  %576 = vmatpush.msra.mxu0 %v539_v1  ;;  %v542_v63 = vld [vmem:[%s1443_s2 + $0x18] sm:$0xff] }
 0x117   :  { %853 = vpow2.f32 %v373_v2  ;;  %604 = vmatpush.msra.mxu1 %v542_v63  ;;  %v541_v2 = vld [vmem:[%s1443_s2 + $0x10] sm:$0xff] }
 0x118   :  { %v1202_v3 = vpop.xlane.xlu2 %336  ;;  %v1204_v4 = vpop.xlane.xlu0 %342 }
 0x119   :  { %v359_v53 = vsub.f32 %v1111_v9, %v1202_v3  ;;  %v361_v5 = vsub.f32 %v1109_v8, %v1204_v4  ;;  %v404_v8 = vsel %vm301_vm1, %v1210_v6, 0.0  ;;  %v1228_v0 = vpop.xlane.xlu1 %345  ;;  %605 = vmatpush.msra.mxu1 %v541_v2  ;;  %vm489_vm10 = vcmp.gt.f32.partialorder %v1204_v4, -1e+29 }
 0x11a   :  { %v362_v30 = vsub.f32 %v1126_v18, %v1228_v0  ;;  %vm487_vm13 = vcmp.gt.f32.partialorder %v1202_v3, -1e+29  ;;  %vm490_vm15 = vcmp.gt.f32.partialorder %v1228_v0, -1e+29 }
 0x11b   :  { %v1212_v7 = vpop.eup %849  ;;  %v387_v10 = vmul.f32 1.442695, %v359_v53  ;;  %v391_v11 = vmul.f32 1.442695, %v361_v5  ;;  %v546_v53 = vld [vmem:[%s1443_s2 + $0x38] sm:$0xff]  ;;  %v544_v5 = vld [vmem:[%s1443_s2 + $0x28] sm:$0xff] }
 0x11c   :  { %v1214_v12 = vpop.eup %851  ;;  %v416_v14 = vsel %vm301_vm1, %v1212_v7, 0.0  ;;  %v393_v33 = vmul.f32 1.442695, %v362_v30  ;;  %662 = vmatpush.msra.mxu3 %v546_v53  ;;  %633 = vmatpush.msra.mxu2 %v544_v5 }
 0x11d   :  { %855 = vpow2.f32 %v387_v10  ;;  %417 = vadd.xlane.f32.xlu0 %v416_v14  ;;  %405 = vadd.xlane.f32.xlu2 %v404_v8  ;;  %v398_v9 = vsel %vm301_vm1, %v1214_v12, 0.0  ;;  %v1234_v23 = vpop.eup %853  ;;  %v545_v10 = vld [vmem:[%s1443_s2 + $0x30] sm:$0xff] }
 0x11e   :  { %857 = vpow2.f32 %v391_v11  ;;  %399 = vadd.xlane.f32.xlu1 %v398_v9  ;;  %663 = vmatpush.msra.mxu3 %v545_v10  ;;  %v543_v11 = vld [vmem:[%s1443_s2 + $0x20] sm:$0xff] }
 0x11f   :  { %859 = vpow2.f32 %v379_v15  ;;  %634 = vmatpush.msra.mxu2 %v543_v11  ;;  %v552_v15 = vld [vmem:[%s1443_s2 + $0x68] sm:$0xff] }
 0x120   :  { %v1224_v16 = vpop.xlane.xlu2 %330  ;;  %v1226_v17 = vpop.xlane.xlu0 %339 }
 0x121   :  { %v357_v19 = vsub.f32 %v1130_v20, %v1224_v16  ;;  %v360_v22 = vsub.f32 %v1132_v21, %v1226_v17  ;;  %v410_v20 = vsel %vm301_vm1, %v1234_v23, 0.0  ;;  %749 = vmatpush.msrb.mxu2 %v552_v15  ;;  %vm485_vm11 = vcmp.gt.f32.partialorder %v1224_v16, -1e+29 }
 0x123   :  { %v1236_v24 = vpop.eup %855  ;;  %v383_v25 = vmul.f32 1.442695, %v357_v19  ;;  %v389_v26 = vmul.f32 1.442695, %v360_v22  ;;  %v554_v19 = vld [vmem:[%s1443_s2 + $0x78] sm:$0xff] }
 0x124   :  { %v1238_v27 = vpop.eup %857  ;;  %v431_v31 = vsel %vm65_vm0, %v1236_v24, 0.0  ;;  %778 = vmatpush.msrb.mxu3 %v554_v19 }
 0x125   :  { %861 = vpow2.f32 %v383_v25  ;;  %432 = vadd.xlane.f32.xlu0 %v431_v31  ;;  %411 = vadd.xlane.f32.xlu2 %v410_v20  ;;  %v437_v21 = vsel %vm65_vm0, %v1238_v27, 0.0  ;;  %v1256_v43 = vpop.eup %859  ;;  %v553_v25 = vld [vmem:[%s1443_s2 + $0x70] sm:$0xff]  ;;  %v551_v31 = vld [vmem:[%s1443_s2 + $0x60] sm:$0xff] }
 0x126   :  { %863 = vpow2.f32 %v389_v26  ;;  %438 = vadd.xlane.f32.xlu1 %v437_v21  ;;  %779 = vmatpush.msrb.mxu3 %v553_v25  ;;  %v550_v26 = vld [vmem:[%s1443_s2 + $0x58] sm:$0xff] }
 0x127   :  { %865 = vpow2.f32 %v393_v33  ;;  %720 = vmatpush.msrb.mxu1 %v550_v26  ;;  %750 = vmatpush.msrb.mxu2 %v551_v31  ;;  %v547_v33 = vld [vmem:[%s1443_s2 + $0x40] sm:$0xff] }
 0x128   :  { %v1248_v35 = vpop.xlane.xlu2 %327  ;;  %v1250_v38 = vpop.xlane.xlu0 %333 }
 0x129   :  { %v356_v18 = vsub.f32 %v1144_v28, %v1248_v35  ;;  %v358_v42 = vsub.f32 %v1146_v29, %v1250_v38  ;;  %v419_v28 = vsel %vm65_vm0, %v1256_v43, 0.0  ;;  %vm484_vm14 = vcmp.gt.f32.partialorder %v1248_v35, -1e+29 }
 0x12b   :  { %v1258_v44 = vpop.eup %861  ;;  %v381_v46 = vmul.f32 1.442695, %v356_v18  ;;  %v385_v47 = vmul.f32 1.442695, %v358_v42  ;;  %v549_v18 = vld [vmem:[%s1443_s2 + $0x50] sm:$0xff] }
 0x12c   :  { %v1260_v49 = vpop.eup %863  ;;  %v425_v41 = vsel %vm65_vm0, %v1258_v44, 0.0  ;;  %721 = vmatpush.msrb.mxu1 %v549_v18 }
 0x12d   :  { %867 = vpow2.f32 %v381_v46  ;;  %426 = vadd.xlane.f32.xlu0 %v425_v41  ;;  %420 = vadd.xlane.f32.xlu2 %v419_v28  ;;  %v434_v29 = vsel %vm301_vm1, %v1260_v49, 0.0  ;;  %v1268_v52 = vpop.eup %865 }
 0x12e   :  { %869 = vpow2.f32 %v385_v47  ;;  %435 = vadd.xlane.f32.xlu1 %v434_v29  ;;  %v440_v58 = vsel %vm301_vm1, %v1268_v52, 0.0 }
 0x133   :  { %v1270_v54 = vpop.eup %867 }
 0x134   :  { %v1272_v48 = vpop.eup %869  ;;  %v422_v57 = vsel %vm301_vm1, %v1270_v54, 0.0 }
 0x135   :  { %423 = vadd.xlane.f32.xlu0 %v422_v57  ;;  %441 = vadd.xlane.f32.xlu2 %v440_v58  ;;  %v428_v59 = vsel %vm301_vm1, %v1272_v48, 0.0 }
 0x136   :  { %429 = vadd.xlane.f32.xlu1 %v428_v59 }
 0x179   :  { %v397_v13 = vpop.xlane.xlu0 %396 }
 0x17a   :  { %871 = vrcp.f32 %v397_v13 }
 0x180   :  { %v872_v14 = vpop.eup %871 }
 0x181   :  { %v459_v8 = vmul.f32 %v872_v14, %v1162_v40  ;;  %v403_v9 = vpop.xlane.xlu1 %402  ;;  %v548_v40 = vld [vmem:[%s1443_s2 + $0x48] sm:$0xff] }
 0x182   :  { %873 = vrcp.f32 %v403_v9  ;;  %691 = vmatpush.msrb.mxu0 %v548_v40 }
 0x183   :  { %v523_v22 = vsel %vm475_vm2, %v459_v8, 0.0  ;;  %vm488_vm2 = vcmp.gt.f32.partialorder %v1226_v17, -1e+29 }
 0x184   :  { %823 = vmatmul.msk.f32.vlgmr.msra.gmra.mxu0 %vm65_vm0, %v523_v22 }
 0x185   :  { %692 = vmatpush.msrb.mxu0 %v547_v33 }
 0x188   :  { %v874_v32 = vpop.eup %873  ;;  %v415_v30 = vpop.xlane.xlu2 %414 }
 0x189   :  { %v461_v20 = vmul.f32 %v874_v32, %v1178_v50  ;;  %875 = vrcp.f32 %v415_v30  ;;  %v409_v21 = vpop.xlane.xlu1 %408 }
 0x18a   :  { %877 = vrcp.f32 %v409_v21 }
 0x18b   :  { %v525_v42 = vsel %vm477_vm3, %v461_v20, 0.0  ;;  %vm486_vm3 = vcmp.gt.f32.partialorder %v1250_v38, -1e+29 }
 0x18c   :  { %825 = vmatmul.msk.f32.vlgmr.msra.gmra.mxu1 %vm65_vm0, %v525_v42 }
 0x18f   :  { %v876_v50 = vpop.eup %875 }
 0x190   :  { %v418_v46 = vpop.xlane.xlu0 %417  ;;  %v878_v47 = vpop.eup %877  ;;  %v465_v41 = vmul.f32 %v876_v50, %v1192_v60 }
 0x191   :  { %879 = vrcp.f32 %v418_v46  ;;  %v406_v28 = vpop.xlane.xlu2 %405  ;;  %v463_v29 = vmul.f32 %v878_v47, %v1190_v51  ;;  %v400_v57 = vpop.xlane.xlu1 %399 }
 0x192   :  { %881 = vrcp.f32 %v406_v28  ;;  %v529_v37 = vsel %vm481_vm4, %v465_v41, 0.0 }
 0x193   :  { %883 = vrcp.f32 %v400_v57  ;;  %829 = vmatmul.msk.f32.vlgmr.msra.gmra.mxu3 %vm65_vm0, %v529_v37  ;;  %v527_v58 = vsel %vm479_vm5, %v463_v29, 0.0 }
 0x194   :  { %827 = vmatmul.msk.f32.vlgmr.msra.gmra.mxu2 %vm65_vm0, %v527_v58 }
 0x197   :  { %v880_v59 = vpop.eup %879 }
 0x198   :  { %v882_v61 = vpop.eup %881  ;;  %v433_v60 = vpop.xlane.xlu0 %432  ;;  %v466_v1 = vmul.f32 %v880_v59, %v1212_v7 }
 0x199   :  { %v884_v63 = vpop.eup %883  ;;  %v412_v45 = vpop.xlane.xlu2 %411  ;;  %v462_v51 = vmul.f32 %v882_v61, %v1210_v6 }
 0x19a   :  { %885 = vrcp.f32 %v412_v45  ;;  %v439_v36 = vpop.xlane.xlu1 %438  ;;  %v530_v2 = vsel %vm482_vm6, %v466_v1, 0.0  ;;  %v460_v53 = vmul.f32 %v884_v63, %v1214_v12 }
 0x19b   :  { %887 = vrcp.f32 %v439_v36  ;;  %v526_v5 = vsel %vm478_vm7, %v462_v51, 0.0  ;;  %830 = vmatmul.msk.f32.gmra.mxu3 %vm65_vm0, %v530_v2 }
 0x19c   :  { %826 = vmatmul.msk.f32.gmra.mxu1 %vm65_vm0, %v526_v5  ;;  %v524_v7 = vsel %vm476_vm8, %v460_v53, 0.0  ;;  %889 = vrcp.f32 %v433_v60 }
 0x19d   :  { %824 = vmatmul.msk.f32.gmra.mxu0 %vm65_vm0, %v524_v7 }
 0x1a0   :  { %v886_v55 = vpop.eup %885  ;;  %v427_v6 = vpop.xlane.xlu0 %426 }
 0x1a1   :  { %v888_v39 = vpop.eup %887  ;;  %891 = vrcp.f32 %v427_v6  ;;  %v421_v10 = vpop.xlane.xlu2 %420  ;;  %v464_v11 = vmul.f32 %v886_v55, %v1234_v23 }
 0x1a2   :  { %v473_v56 = vmul.f32 %v888_v39, %v1238_v27  ;;  %893 = vrcp.f32 %v421_v10  ;;  %v436_v12 = vpop.xlane.xlu1 %435  ;;  %v890_v14 = vpop.eup %889 }
 0x1a3   :  { %v528_v13 = vsel %vm480_vm9, %v464_v11, 0.0  ;;  %895 = vrcp.f32 %v436_v12  ;;  %v471_v15 = vmul.f32 %v890_v14, %v1236_v24 }
 0x1a4   :  { %828 = vmatmul.msk.f32.gmra.mxu2 %vm65_vm0, %v528_v13  ;;  %v537_v8 = vsel %vm489_vm10, %v473_v56, 0.0 }
 0x1a5   :  { %837 = vmatmul.msk.f32.vlgmr.msrb.gmra.mxu3 %vm65_vm0, %v537_v8  ;;  %v535_v24 = vsel %vm487_vm13, %v471_v15, 0.0 }
 0x1a7   :  { %v892_v9 = vpop.eup %891 }
 0x1a8   :  { %v894_v23 = vpop.eup %893  ;;  %v469_v34 = vmul.f32 %v892_v9, %v1258_v44  ;;  %v424_v19 = vpop.xlane.xlu0 %423 }
 0x1a9   :  { %v467_v27 = vmul.f32 %v894_v23, %v1256_v43  ;;  %897 = vrcp.f32 %v424_v19  ;;  %v442_v4 = vpop.xlane.xlu2 %441  ;;  %v896_v44 = vpop.eup %895 }
 0x1aa   :  { %899 = vrcp.f32 %v442_v4  ;;  %v430_v22 = vpop.xlane.xlu1 %429  ;;  %v533_v25 = vsel %vm485_vm11, %v469_v34, 0.0  ;;  %v472_v43 = vmul.f32 %v896_v44, %v1260_v49 }
 0x1ab   :  { %901 = vrcp.f32 %v430_v22  ;;  %v531_v40 = vsel %vm483_vm12, %v467_v27, 0.0  ;;  %833 = vmatmul.msk.f32.vlgmr.msrb.gmra.mxu1 %vm65_vm0, %v533_v25 }
 0x1ac   :  { %831 = vmatmul.msk.f32.vlgmr.msrb.gmra.mxu0 %vm65_vm0, %v531_v40  ;;  %835 = vmatmul.msk.f32.vlgmr.msrb.gmra.mxu2 %vm65_vm0, %v535_v24  ;;  %v536_v20 = vsel %vm488_vm2, %v472_v43, 0.0 }
 0x1af   :  { %v898_v16 = vpop.eup %897 }
 0x1b0   :  { %v900_v26 = vpop.eup %899  ;;  %v468_v62 = vmul.f32 %v898_v16, %v1270_v54 }
 0x1b1   :  { %v902_v3 = vpop.eup %901  ;;  %v474_v32 = vmul.f32 %v900_v26, %v1268_v52 }
 0x1b2   :  { %v532_v30 = vsel %vm484_vm14, %v468_v62, 0.0  ;;  %v470_v31 = vmul.f32 %v902_v3, %v1272_v48 }
 0x1b3   :  { %v538_v21 = vsel %vm490_vm15, %v474_v32, 0.0 }
 0x1b4   :  { %832 = vmatmul.msk.f32.gmra.mxu0 %vm65_vm0, %v532_v30  ;;  %836 = vmatmul.msk.f32.gmra.mxu2 %vm65_vm0, %v536_v20  ;;  %v534_v49 = vsel %vm486_vm3, %v470_v31, 0.0 }
 0x1b5   :  { %838 = vmatmul.msk.f32.gmra.mxu3 %vm65_vm0, %v538_v21  ;;  %834 = vmatmul.msk.f32.gmra.mxu1 %vm65_vm0, %v534_v49 }
 0x201   :  { %v578_v35 = vpop.f32.mrf.mxu0 }
 0x202   :  { %787 = vst.msk [vmem:[%s1444_s4] sm:$0xff] %vm65_vm0, %v578_v35 }
 0x209   :  { %v607_v17 = vpop.f32.mrf.mxu1 }
 0x20a   :  { %789 = vst.msk [vmem:[%s1444_s4 + $0x10] sm:$0xff] %vm65_vm0, %v607_v17 }
 0x216   :  { %v665_v0 = vpop.f32.mrf.mxu3 }
 0x217   :  { %793 = vst.msk [vmem:[%s1444_s4 + $0x30] sm:$0xff] %vm65_vm0, %v665_v0  ;;  %v636_v38 = vpop.f32.mrf.mxu2 }
 0x218   :  { %791 = vst.msk [vmem:[%s1444_s4 + $0x20] sm:$0xff] %vm65_vm0, %v636_v38 }
 0x219   :  { %v610_v52 = vpop.f32.mrf.mxu1 }
 0x21a   :  { %790 = vst.msk [vmem:[%s1444_s4 + $0x18] sm:$0xf] %vm301_vm1, %v610_v52  ;;  %v581_v54 = vpop.f32.mrf.mxu0 }
 0x21b   :  { %788 = vst.msk [vmem:[%s1444_s4 + $0x8] sm:$0xf] %vm301_vm1, %v581_v54 }
 0x21e   :  { %v668_v48 = vpop.f32.mrf.mxu3 }
 0x21f   :  { %794 = vst.msk [vmem:[%s1444_s4 + $0x38] sm:$0xf] %vm301_vm1, %v668_v48 }
 0x227   :  { %v639_v33 = vpop.f32.mrf.mxu2 }
 0x228   :  { %792 = vst.msk [vmem:[%s1444_s4 + $0x28] sm:$0xf] %vm301_vm1, %v639_v33  ;;  %v723_v18 = vpop.f32.mrf.mxu1  ;;  %v781_v42 = vpop.f32.mrf.mxu3 }
 0x229   :  { %v694_v50 = vpop.f32.mrf.mxu0  ;;  %797 = vst.msk [vmem:[%s1444_s4 + $0x50] sm:$0xff] %vm65_vm0, %v723_v18 }
 0x22a   :  { %795 = vst.msk [vmem:[%s1444_s4 + $0x40] sm:$0xff] %vm65_vm0, %v694_v50 }
 0x22b   :  { %801 = vst.msk [vmem:[%s1444_s4 + $0x70] sm:$0xff] %vm65_vm0, %v781_v42 }
 0x22f   :  { %v752_v46 = vpop.f32.mrf.mxu2 }
 0x230   :  { %799 = vst.msk [vmem:[%s1444_s4 + $0x60] sm:$0xff] %vm65_vm0, %v752_v46 }
 0x231   :  { %v697_v47 = vpop.f32.mrf.mxu0 }
 0x232   :  { %796 = vst.msk [vmem:[%s1444_s4 + $0x48] sm:$0xf] %vm301_vm1, %v697_v47  ;;  %v726_v41 = vpop.f32.mrf.mxu1 }
 0x233   :  { %798 = vst.msk [vmem:[%s1444_s4 + $0x58] sm:$0xf] %vm301_vm1, %v726_v41 }
 0x237   :  { %v755_v28 = vpop.f32.mrf.mxu2 }
 0x238   :  { %800 = vst.msk [vmem:[%s1444_s4 + $0x68] sm:$0xf] %vm301_vm1, %v755_v28  ;;  %v784_v29 = vpop.f32.mrf.mxu3 }
 0x239   :  { %802 = vst.msk [vmem:[%s1444_s4 + $0x78] sm:$0xf] %vm301_vm1, %v784_v29 }

</bundles_post_ra>
